<compile_context>
chip_gen: v7x
topology: tpu7x:2x2x1
jax: 0.10.0
libtpu: 0.0.40
codegen_flags: <defaults>
</compile_context>

<pallas_src>
import jax
import jax.numpy as jnp
from jax.experimental import pallas as pl
from jax.experimental.pallas import tpu as pltpu


def _rev_cumsum_kernel(x_ref, tri_ref, o_ref, carry_ref):
    """Grid = (row_tiles, col_tiles); col axis sweeps blocks right -> left."""
    j = pl.program_id(1)

    @pl.when(j == 0)
    def _():
        carry_ref[...] = jnp.zeros_like(carry_ref)

    x = x_ref[...]                                     # (TM, CB), native dtype
    # Within-block reverse cumsum on the MXU; f32 accumulation.
    s = jnp.dot(x, tri_ref[...], preferred_element_type=jnp.float32)
    # Add the suffix sum carried from all column blocks to the right.
    o_ref[...] = (s + carry_ref[...]).astype(o_ref.dtype)
    # s[:, 0] is the total of this whole block -> extend the carried suffix sum.
    carry_ref[...] = carry_ref[...] + s[:, 0:1]


def _round_up(a: int, b: int) -> int:
    return (a + b - 1) // b * b


def reverse_cumsum(x, *, tile_rows=None, col_block=None):
    """Reverse cumsum along axis=1 of a 2D array x[N, M] (PyTorch dim=1)."""
    assert x.ndim == 2, "Input tensor must be 2D"
    n, m = x.shape
    out_dtype = x.dtype

    if x.dtype == jnp.bfloat16:
        row_align, default_rows = 16, 512
    else:
        row_align, default_rows = 8, 256

    # Column block: full (lane-padded) width if small, else 512-wide blocks.
    if col_block is None:
        col_block = min(512, _round_up(m, 128))
    m_pad = _round_up(m, col_block)

    # Row tile: big enough to fill the MXU, no bigger than the (aligned) input.
    if tile_rows is None:
        tile_rows = min(default_rows, _round_up(n, row_align))
    n_pad = _round_up(n, tile_rows)

    x_p = x
    if (n_pad, m_pad) != (n, m):
        x_p = jnp.pad(x, ((0, n_pad - n), (0, m_pad - m)))

    # Triangular selector T[k, j] = 1 iff k >= j  =>  (x @ T)[:, j] = sum_{k>=j} x[:, k]
    k_idx = jnp.arange(col_block)[:, None]
    j_idx = jnp.arange(col_block)[None, :]
    tri = (k_idx >= j_idx).astype(x_p.dtype)           # exact 0/1 in bf16 too

    grid = (n_pad // tile_rows, m_pad // col_block)
    num_cb = grid[1]
    itemsize = jnp.dtype(x_p.dtype).itemsize

    out = pl.pallas_call(
        _rev_cumsum_kernel,
        out_shape=jax.ShapeDtypeStruct((n_pad, m_pad), out_dtype),
        grid_spec=pltpu.PrefetchScalarGridSpec(
            num_scalar_prefetch=0,
            grid=grid,
            in_specs=[
                # x: column blocks visited right -> left.
                pl.BlockSpec((tile_rows, col_block),
                             lambda i, j: (i, num_cb - 1 - j)),
                # tri: constant block index -> DMA'd once, VMEM-resident.
                pl.BlockSpec((col_block, col_block), lambda i, j: (0, 0)),
            ],
            out_specs=pl.BlockSpec((tile_rows, col_block),
                                   lambda i, j: (i, num_cb - 1 - j)),
            scratch_shapes=[pltpu.VMEM((tile_rows, 1), jnp.float32)],
        ),
        compiler_params=pltpu.CompilerParams(
            dimension_semantics=("parallel", "arbitrary"),
            vmem_limit_bytes=32 * 1024 * 1024,
        ),
        cost_estimate=pl.CostEstimate(
            flops=2 * n_pad * m_pad * col_block,
            transcendentals=0,
            bytes_accessed=2 * n_pad * m_pad * itemsize
                           + col_block * col_block * itemsize,
        ),
    )(x_p, tri)

    if (n_pad, m_pad) != (n, m):
        out = out[:n, :m]
    return out


def _reference(x):
    return jnp.flip(jnp.cumsum(jnp.flip(x, axis=1), axis=1), axis=1)


if __name__ == "__main__":
    key = jax.random.PRNGKey(0)

    # Primary small shape consistent with the module's forward (2D, dim=1).
    N, M = 8, 128
    x = jax.random.normal(key, (N, M), dtype=jnp.float32)
    y = jax.block_until_ready(reverse_cumsum(x))
    assert y.shape == x.shape and y.dtype == x.dtype
    assert jnp.allclose(y, _reference(x), atol=1e-3, rtol=1e-4)

    # Non-aligned shape -> exercises the zero-pad + slice path.
    k1, k2 = jax.random.split(key)
    x2 = jax.random.normal(k1, (10, 200), dtype=jnp.float32)
    y2 = jax.block_until_ready(reverse_cumsum(x2))
    assert y2.shape == x2.shape
    assert jnp.allclose(y2, _reference(x2), atol=1e-3, rtol=1e-4)

    # Multi-block rows AND columns -> exercises the carried suffix-sum scan.
    x3 = jax.random.normal(k2, (512, 1024), dtype=jnp.float32)
    y3 = jax.block_until_ready(reverse_cumsum(x3))
    assert y3.shape == x3.shape
    assert jnp.allclose(y3, _reference(x3), atol=1e-3, rtol=1e-3)

    print("KERNEL_OK")
</pallas_src>

<mosaic_0001>
module attributes {stable_mosaic.version = 11 : i64} {
  func.func @_rev_cumsum_kernel(%arg0: i32, %arg1: i32, %arg2: memref<8x128xf32, #tpu.memory_space<vmem>>, %arg3: memref<128x128xf32, #tpu.memory_space<vmem>>, %arg4: memref<8x128xf32, #tpu.memory_space<vmem>>, %arg5: memref<8x1xf32, #tpu.memory_space<vmem>>) attributes {dimension_semantics = [#tpu.dimension_semantics<parallel>, #tpu.dimension_semantics<arbitrary>], iteration_bounds = array<i64: 1, 1>, scalar_prefetch = 0 : i64, scratch_operands = 1 : i64, tpu.core_type = #tpu.core_type<tc>, window_params = [{transform_indices = @transform_0, window_bounds = array<i64: 8, 128>}, {pipeline_mode = #tpu.pipeline_mode<synchronous>, transform_indices = @transform_1, window_bounds = array<i64: 128, 128>}, {transform_indices = @transform_2, window_bounds = array<i64: 8, 128>}]} {
    %c0_i32 = arith.constant 0 : i32
    %0 = arith.cmpi eq, %arg1, %c0_i32 : i32
    %1 = arith.extui %0 : i1 to i32
    %c0_i32_0 = arith.constant 0 : i32
    %2 = arith.cmpi ne, %1, %c0_i32_0 : i32
    scf.if %2 {
      %cst_12 = arith.constant 0.000000e+00 : f32
      %14 = vector.broadcast %cst_12 : f32 to vector<8x1xf32>
      %c0_13 = arith.constant 0 : index
      %c0_14 = arith.constant 0 : index
      %15 = vector.load %arg5[%c0_13, %c0_14] : memref<8x1xf32, #tpu.memory_space<vmem>>, vector<8x1xf32>
      tpu.vector_store %arg5[%c0_13, %c0_14], %14 {strides = array<i32>} : memref<8x1xf32, #tpu.memory_space<vmem>>, vector<8x1xf32>,
    } else {
    }
    %c0 = arith.constant 0 : index
    %c0_1 = arith.constant 0 : index
    %3 = vector.load %arg2[%c0, %c0_1] : memref<8x128xf32, #tpu.memory_space<vmem>>, vector<8x128xf32>
    %c0_2 = arith.constant 0 : index
    %c0_3 = arith.constant 0 : index
    %4 = vector.load %arg3[%c0_2, %c0_3] : memref<128x128xf32, #tpu.memory_space<vmem>>, vector<128x128xf32>
    %cst = arith.constant dense<0.000000e+00> : vector<8x128xf32>
    %5 = tpu.matmul %3, %4, %cst {dimension_numbers = #tpu.dot_dimension_numbers<[1], [0], [0], [1], [0, 0, 1, 1], [], []>} : vector<8x128xf32>, vector<128x128xf32>, vector<8x128xf32> -> vector<8x128xf32>
    %c0_4 = arith.constant 0 : index
    %c0_5 = arith.constant 0 : index
    %6 = vector.load %arg5[%c0_4, %c0_5] : memref<8x1xf32, #tpu.memory_space<vmem>>, vector<8x1xf32>
    %7 = vector.broadcast %6 : vector<8x1xf32> to vector<8x128xf32>
    %8 = arith.addf %5, %7 : vector<8x128xf32>
    %c0_6 = arith.constant 0 : index
    %c0_7 = arith.constant 0 : index
    %9 = vector.load %arg4[%c0_6, %c0_7] : memref<8x128xf32, #tpu.memory_space<vmem>>, vector<8x128xf32>
    tpu.vector_store %arg4[%c0_6, %c0_7], %8 {strides = array<i32>} : memref<8x128xf32, #tpu.memory_space<vmem>>, vector<8x128xf32>,
    %c0_8 = arith.constant 0 : index
    %c0_9 = arith.constant 0 : index
    %10 = vector.load %arg5[%c0_8, %c0_9] : memref<8x1xf32, #tpu.memory_space<vmem>>, vector<8x1xf32>
    %11 = vector.extract_strided_slice %5 {offsets = [0, 0], sizes = [8, 1], strides = [1, 1]} : vector<8x128xf32> to vector<8x1xf32>
    %12 = arith.addf %10, %11 : vector<8x1xf32>
    %c0_10 = arith.constant 0 : index
    %c0_11 = arith.constant 0 : index
    %13 = vector.load %arg5[%c0_10, %c0_11] : memref<8x1xf32, #tpu.memory_space<vmem>>, vector<8x1xf32>
    tpu.vector_store %arg5[%c0_10, %c0_11], %12 {strides = array<i32>} : memref<8x1xf32, #tpu.memory_space<vmem>>, vector<8x1xf32>,
    return
  }
  func.func @transform_0(%arg0: i32, %arg1: i32) -> (i32, i32) {
    %c0_i32 = arith.constant 0 : i32
    %0 = arith.subi %c0_i32, %arg1 : i32
    %c0_i32_0 = arith.constant 0 : i32
    return %arg0, %0 : i32, i32
  }
  func.func @transform_1(%arg0: i32, %arg1: i32) -> (i32, i32) {
    %c0_i32 = arith.constant 0 : i32
    %c0_i32_0 = arith.constant 0 : i32
    %c0_i32_1 = arith.constant 0 : i32
    return %c0_i32, %c0_i32_0 : i32, i32
  }
  func.func @transform_2(%arg0: i32, %arg1: i32) -> (i32, i32) {
    %c0_i32 = arith.constant 0 : i32
    %0 = arith.subi %c0_i32, %arg1 : i32
    %c0_i32_0 = arith.constant 0 : i32
    return %arg0, %0 : i32, i32
  }
}

</mosaic_0001>

<bundles_post_ra>
// kernel: tpu_custom_call.1
= control target key start
LH: loop header
LB: loop body
LE: loop exit
PB: predicated region body
PF: predicated region fallthrough
CT: control target
= control target key end

     0   :  { %7 = vsyncpa [#allocation4], 0  ;;  %s398_s0 = inlined_call_operand.hbm [shape: f32[8,128], index: 0, kind: input, shape index: {}]   ;;  %s399_s1 = inlined_call_operand.hbm [shape: f32[128,128], index: 1, kind: input, shape index: {}]   ;;  %s400_s2 = inlined_call_operand.hbm [shape: f32[8,128], index: 2, kind: output, shape index: {}]  }
   0x1   :  { %8 = vsyncpa [#allocation7], 0 }
   0x2   :  { %9 = vsyncpa [#allocation5], 0  ;;  %s329_s9 = smov [#allocation3]   ;;  %s330_s11 = smov [#allocation6]  }
   0x3   :  { %s19_s10 = sshll.u32 %s329_s9, 4  ;;  %s28_s12 = sshll.u32 %s330_s11, 4  ;;  %s20_s10 = int_to_ptr.vmem [resolvable:$true] %s19_s10  ;;  %s353_s12 = int_to_ptr.vmem [resolvable:$true] %s28_s12 }
   0x4   :  { %s257_s15 = scalar_lea.hbm %s398_s0, 128 }
   0x5   :  { %p258_p0 = scmp.ne.s32.totalorder %s398_s0, %s257_s15  ;;  %p261_p1 = scmp.lt.u32.totalorder %s257_s15, %s398_s0 }
   0x7   :  { %p263_p2 = pnand %p261_p1, %p258_p0 }
   0x9   :  { %266 = shalt.err (!%p263_p2)
}
   0xa   :  { %s267_s20 = scalar_lea.vmem %s20_s10, 128  ;;  %p272_p4 = scmp.lt.s32.totalorder %s20_s10, %s20_s10 }
   0xb   :  { %p268_p3 = scmp.ne.s32.totalorder %s20_s10, %s267_s20  ;;  %p273_p5 = scmp.lt.s32.totalorder %s267_s20, %s267_s20 }
   0xd   :  { %p274_p6 = por %p273_p5, %p272_p4 }
   0xf   :  { %p275_p7 = pnand %p274_p6, %p268_p3 }
  0x11   :  { %278 = shalt.err (!%p275_p7)
}
  0x12   :  { %22 = dma.hbm_to_vmem [thread:$0]  %s398_s0, 128, %s20_s10, [#allocation4]  }
  0x13   :  { %s279_s25 = scalar_lea.hbm %s399_s1, 2048 }
  0x14   :  { %p280_p8 = scmp.ne.s32.totalorder %s399_s1, %s279_s25  ;;  %p283_p9 = scmp.lt.u32.totalorder %s279_s25, %s399_s1 }
  0x16   :  { %p285_p10 = pnand %p283_p9, %p280_p8 }
  0x18   :  { %288 = shalt.err (!%p285_p10)
}
  0x19   :  { %s289_s30 = scalar_lea.vmem %s353_s12, 2048  ;;  %p294_p12 = scmp.lt.s32.totalorder %s353_s12, %s353_s12 }
  0x1a   :  { %p290_p11 = scmp.ne.s32.totalorder %s353_s12, %s289_s30  ;;  %p295_p13 = scmp.lt.s32.totalorder %s289_s30, %s289_s30 }
  0x1c   :  { %p296_p0 = por %p295_p13, %p294_p12 }
  0x1e   :  { %p297_p1 = pnand %p296_p0, %p290_p11 }
  0x20   :  { %300 = shalt.err (!%p297_p1)
}
  0x21   :  { %s331_s0 = smov 128   ;;  %s332_s3 = smov 8  }
  0x22   :  { %34 = dma.hbm_to_vmem [thread:$0]  %s399_s1, 2048, %s353_s12, [#allocation7], %s331_s0, %s331_s0, %s332_s3  }
  0x23   :  { %323 = dma.done.wait [#allocation4], 128  }
  0x24   :  { %324 = vsyncadd [#allocation4], 4294967168 }
  0x25   :  { %325 = dma.done.wait [#allocation7], 2048  }
  0x26   :  { %326 = vsyncadd [#allocation7], 4294965248  ;;  %vm47_vm0 = vcmask 7168   ;;  %v333_v0 = vmov 0.0|0.0   ;;  %v334_v1 = vmov 0.0   ;;  %vm335_vm1 = vmmov 0  }
  0x27   :  { %223 = vmatprep.subr.bf16.mxu0 %v333_v0  ;;  %48 = vst.msk [vmem:[#allocation2] sm:$0xff] %vm47_vm0, %v334_v1  ;;  %220 = vmatprep.mubr.msk.f32.mxu0 %vm335_vm1, %v334_v1  ;;  %v336_v2 = vmov 0   ;;  %v50_v3 = vld [vmem:[#allocation6] sm:$0xff]  ;;  %v51_v4 = vld [vmem:[#allocation6 + $0x8] sm:$0xff]  ;;  %v52_v5 = vld [vmem:[#allocation6 + $0x10] sm:$0xff]  ;;  %s337_s1 = smov [#allocation8]  }
  0x28   :  { %256 = vset.pattern.permute.xlu0 %v336_v2  ;;  %v224_v6 = vpack.c.bf16 %v51_v4, %v50_v3  ;;  %v53_v7 = vld [vmem:[#allocation6 + $0x18] sm:$0xff]  ;;  %v54_v9 = vld [vmem:[#allocation6 + $0x20] sm:$0xff]  ;;  %v55_v10 = vld [vmem:[#allocation6 + $0x28] sm:$0xff]  ;;  %s157_s6 = sshll.u32 %s337_s1, 4  ;;  %s158_s6 = int_to_ptr.vmem [resolvable:$true] %s157_s6 }
  0x29   :  { %v227_v8 = vpack.c.bf16 %v53_v7, %v52_v5  ;;  %v230_v12 = vpack.c.bf16 %v55_v10, %v54_v9  ;;  %v56_v13 = vld [vmem:[#allocation6 + $0x30] sm:$0xff]  ;;  %v57_v14 = vld [vmem:[#allocation6 + $0x38] sm:$0xff]  ;;  %v58_v16 = vld [vmem:[#allocation6 + $0x40] sm:$0xff]  ;;  %s301_s7 = scalar_lea.vmem %s158_s6, 128  ;;  %p306_p3 = scmp.lt.s32.totalorder %s158_s6, %s158_s6 }
  0x2a   :  { %225 = vmatpush3.bf16.msra.mxu0 %v224_v6  ;;  %v233_v15 = vpack.c.bf16 %v57_v14, %v56_v13  ;;  %v59_v17 = vld [vmem:[#allocation6 + $0x48] sm:$0xff]  ;;  %v60_v19 = vld [vmem:[#allocation6 + $0x50] sm:$0xff]  ;;  %v61_v20 = vld [vmem:[#allocation6 + $0x58] sm:$0xff]  ;;  %p302_p2 = scmp.ne.s32.totalorder %s158_s6, %s301_s7  ;;  %p307_p4 = scmp.lt.s32.totalorder %s301_s7, %s301_s7 }
  0x2b   :  { %226 = vmatprep.subr.bf16.mxu0 %v333_v0  ;;  %v236_v18 = vpack.c.bf16 %v59_v17, %v58_v16  ;;  %v239_v21 = vpack.c.bf16 %v61_v20, %v60_v19  ;;  %v62_v22 = vld [vmem:[#allocation6 + $0x60] sm:$0xff]  ;;  %v63_v23 = vld [vmem:[#allocation6 + $0x68] sm:$0xff]  ;;  %v64_v25 = vld [vmem:[#allocation6 + $0x70] sm:$0xff] }
  0x2c   :  { %v242_v24 = vpack.c.bf16 %v63_v23, %v62_v22  ;;  %v65_v26 = vld [vmem:[#allocation6 + $0x78] sm:$0xff]  ;;  %p308_p5 = por %p307_p4, %p306_p3 }
  0x2d   :  { %v245_v27 = vpack.c.bf16 %v65_v26, %v64_v25  ;;  %v49_v28 = vld [vmem:[#allocation3] sm:$0xff] }
  0x2e   :  { %v136_v11 = vld [vmem:[#allocation2] sm:$0xff]  ;;  %228 = vmatpush3.bf16.msra.mxu0 %v227_v8  ;;  %p309_p6 = pnand %p308_p5, %p302_p2 }
  0x2f   :  { %139 = vperm.xlu0 %256, %v136_v11   ;;  %229 = vmatprep.subr.bf16.mxu0 %v333_v0 }
  0x32   :  { %231 = vmatpush3.bf16.msra.mxu0 %v230_v12 }
  0x33   :  { %232 = vmatprep.subr.bf16.mxu0 %v333_v0 }
  0x36   :  { %234 = vmatpush3.bf16.msra.mxu0 %v233_v15 }
  0x37   :  { %235 = vmatprep.subr.bf16.mxu0 %v333_v0 }
  0x3a   :  { %237 = vmatpush3.bf16.msra.mxu0 %v236_v18 }
  0x3b   :  { %238 = vmatprep.subr.bf16.mxu0 %v333_v0 }
  0x3e   :  { %240 = vmatpush3.bf16.msra.mxu0 %v239_v21 }
  0x3f   :  { %241 = vmatprep.subr.bf16.mxu0 %v333_v0 }
  0x42   :  { %243 = vmatpush3.bf16.msra.mxu0 %v242_v24 }
  0x43   :  { %244 = vmatprep.subr.bf16.mxu0 %v333_v0 }
  0x46   :  { %246 = vmatpush3.bf16.msra.mxu0 %v245_v27 }
  0x49   :  { %221 = vmatmul.mubr.f32.vlgmr.msra.gmra.mrb[0].mxu0 %v49_v28 }
  0xae   :  { %v140_v29 = vpop.permute.xlu0 %139 }
 0x11c   :  { %v132_v30 = vpop.f32.mrb[0].mxu0 }
 0x11d   :  { %v145_v31 = vadd.f32 %v136_v11, %v132_v30  ;;  %v142_v32 = vadd.f32 %v140_v29, %v132_v30  ;;  %v222_v33 = vpop.f32.mrb[1].mxu0 }
 0x11f   :  { %147 = vst.msk [vmem:[#allocation2] sm:$0xff] %vm47_vm0, %v145_v31  ;;  %143 = vst [vmem:[#allocation8] sm:$0xff] %v142_v32 }
 0x120   :  { %312 = shalt.err (!%p309_p6)
}
 0x121   :  { %s313_s10 = scalar_lea.hbm %s400_s2, 128 }
 0x122   :  { %p314_p7 = scmp.ne.s32.totalorder %s400_s2, %s313_s10  ;;  %p317_p8 = scmp.lt.u32.totalorder %s313_s10, %s400_s2 }
 0x124   :  { %p319_p9 = pnand %p317_p8, %p314_p7 }
 0x126   :  { %322 = shalt.err (!%p319_p9)
}
 0x127   :  { %160 = dma.vmem_to_hbm [thread:$0]  %s158_s6, 128, %s400_s2, [#allocation5]  }
 0x128   :  { %327 = dma.done.wait [#allocation5], 128  }
 0x129   :  { %328 = vsyncadd [#allocation5], 4294967168 }
 0x12a   :  { %164 = vsyncpa [#allocation4], 1 }
 0x12b   :  { %165 = vsyncpa [#allocation7], 1 }
 0x12c   :  { %166 = vsyncpa [#allocation5], 1 }

</bundles_post_ra>
